<compile_context>
chip_gen: v7x
topology: tpu7x:2x2x1
jax: 0.10.0
libtpu: 0.0.40
codegen_flags: <defaults>
</compile_context>

<pallas_src>
import functools

import jax
import jax.numpy as jnp
from jax.experimental import pallas as pl
from jax.experimental.pallas import tpu as pltpu


def _round_up(n, m):
    return (n + m - 1) // m * m


def _softplus(z):
    # numerically stable log(1 + exp(z))  (== BCEWithLogits building block)
    return jnp.maximum(z, 0.0) + jnp.log1p(jnp.exp(-jnp.abs(z)))


def contrast_loss_kernel(x_ref, y_ref, yneg_ref, w_ref, b_ref, out_ref, *,
                         true_bs, tiles_per_split):
    c = pl.program_id(0)          # core-split axis ("parallel", v7x: 2 TCs)
    i = pl.program_id(1)          # batch-tile reduction axis ("arbitrary")
    tb = x_ref.shape[0]           # batch tile rows (multiple of 8)

    # ---- per-split accumulator init (output block resident across i) ----
    @pl.when(i == 0)
    def _init():
        out_ref[...] = jnp.zeros_like(out_ref)

    # MXU: bf16 inputs, f32 accumulation.
    xw = jnp.dot(x_ref[...], w_ref[...],
                 preferred_element_type=jnp.float32)             # (TB, Dp) f32

    # VPU / EUP path in f32.
    y_pos = y_ref[...].astype(jnp.float32)                       # (TB, Dp)
    y_neg = yneg_ref[...].astype(jnp.float32)                    # (TB, Dp)
    b = b_ref[0, 0]                                              # scalar (SMEM)

    # Bilinear scores: row-wise lane reduction of xw * y (+ bias).
    s_pos = jnp.sum(xw * y_pos, axis=-1, keepdims=True) + b      # (TB, 1)
    s_neg = jnp.sum(xw * y_neg, axis=-1, keepdims=True) + b      # (TB, 1)

    # Mask padded batch rows so they contribute 0 to the sums.
    tile_idx = c * tiles_per_split + i
    rows = jax.lax.broadcasted_iota(jnp.int32, (tb, 1), 0) + tile_idx * tb
    valid = (rows < true_bs).astype(jnp.float32)

    # BCEWithLogits: labels=1 -> softplus(-s); labels=0 -> softplus(s).
    # Softplus only on the (TB, 1) column -> EUP traffic stays O(TB) per tile.
    tile_sum = jnp.sum((_softplus(-s_pos) + _softplus(s_neg)) * valid)

    # Broadcast-add the scalar over the whole (1, 8, 128) accumulator block
    # (plain vreg add, no masked scalar store); wrapper reads [c, 0, 0].
    out_ref[...] += tile_sum


def contrast_loss(x, y, weight, bias, perm_key, *, block_b=256):
    """x, y: (bs, feat); weight: (1, feat, feat); bias: (1,). Returns scalar loss."""
    bs, feat = x.shape

    # Lane-dense / sublane-aligned padded shapes.
    dp = _round_up(feat, 128)                     # feat -> lane dim
    tb = _round_up(min(block_b, _round_up(bs, 8)), 8)
    n_tiles = -(-bs // tb)
    num_splits = 2 if n_tiles >= 2 else 1         # v7x: one per TC; serial elsewhere
    n_tiles = _round_up(n_tiles, num_splits)
    tiles_per_split = n_tiles // num_splits
    bs_p = n_tiles * tb

    # Permutation + negative gather done by XLA in the wrapper (linear in bs,
    # no in-kernel one-hot matmul, no resident y in VMEM).
    idx = jax.random.permutation(perm_key, bs)
    y_neg = jnp.take(y, idx, axis=0)

    def pad_cast(a, dtype):
        a = a.astype(dtype)
        r, cc = a.shape
        if r == bs_p and cc == dp:
            return a                              # already aligned: no extra HBM pass
        return jnp.zeros((bs_p, dp), dtype).at[:r, :cc].set(a)

    # MXU operands in bf16 (halves DMA + VMEM, native MXU rate on all gens).
    x_p = pad_cast(x, jnp.bfloat16)
    y_p = pad_cast(y, jnp.bfloat16)
    yn_p = pad_cast(y_neg, jnp.bfloat16)

    w2 = weight[0].astype(jnp.bfloat16)
    if w2.shape == (dp, dp):
        w_p = w2
    else:
        w_p = jnp.zeros((dp, dp), jnp.bfloat16).at[:feat, :feat].set(w2)
    b2d = bias.reshape(1, 1).astype(jnp.float32)

    kernel = functools.partial(contrast_loss_kernel, true_bs=bs,
                               tiles_per_split=tiles_per_split)

    def tile_map(c, i):                           # streamed (TB, Dp) tiles
        return (c * tiles_per_split + i, 0)

    grid_spec = pltpu.PrefetchScalarGridSpec(
        num_scalar_prefetch=0,
        grid=(num_splits, tiles_per_split),
        in_specs=[
            pl.BlockSpec((tb, dp), tile_map),                    # x      (streamed)
            pl.BlockSpec((tb, dp), tile_map),                    # y      (streamed)
            pl.BlockSpec((tb, dp), tile_map),                    # y_neg  (streamed)
            pl.BlockSpec((dp, dp), lambda c, i: (0, 0)),         # W      (resident)
            pl.BlockSpec(memory_space=pltpu.MemorySpace.SMEM),   # bias scalar
        ],
        # One (1, 8, 128) accumulator block per split, resident across i.
        out_specs=pl.BlockSpec((1, 8, 128), lambda c, i: (c, 0, 0)),
    )

    # VMEM budget: 3 double-buffered bf16 tiles + double-buffered bf16 W
    # + tiny f32 accumulators, plus generous headroom for internal scratch.
    vmem_need = (2 * 3 * tb * dp * 2) + (2 * dp * dp * 2) \
        + (2 * num_splits * 8 * 128 * 4) + (4 << 20)
    vmem_limit = int(min(vmem_need, 64 << 20))

    out = pl.pallas_call(
        kernel,
        out_shape=jax.ShapeDtypeStruct((num_splits, 8, 128), jnp.float32),
        grid_spec=grid_spec,
        compiler_params=pltpu.CompilerParams(
            dimension_semantics=("parallel", "arbitrary"),
            vmem_limit_bytes=vmem_limit),
    )(x_p, y_p, yn_p, w_p, b2d)

    # Combine per-split partial sums; single divide by the true batch size
    # (both BCE means share it).
    return jnp.sum(out[:, 0, 0]) / bs


def _reference(x, y, weight, bias, perm_key):
    # Pure-JAX reference of the same math, with the same bf16 input rounding
    # the kernel applies to the MXU operands (f32 accumulation everywhere).
    bs = x.shape[0]
    idx = jax.random.permutation(perm_key, bs)
    xq = x.astype(jnp.bfloat16).astype(jnp.float32)
    yq = y.astype(jnp.bfloat16).astype(jnp.float32)
    wq = weight[0].astype(jnp.bfloat16).astype(jnp.float32)
    y_neg = yq[idx, :]
    s_pos = jnp.einsum("bi,ij,bj->b", xq, wq, yq) + bias[0]
    s_neg = jnp.einsum("bi,ij,bj->b", xq, wq, y_neg) + bias[0]
    sp = lambda z: jnp.maximum(z, 0.0) + jnp.log1p(jnp.exp(-jnp.abs(z)))
    return jnp.mean(sp(-s_pos)) + jnp.mean(sp(s_neg))


if __name__ == "__main__":
    # Small demo shapes; exercise feature-lane padding (48 -> 128), batch-row
    # padding (30 -> 32), the 2-way "parallel" split and the masked tail.
    bs, feat_size = 30, 48

    key = jax.random.PRNGKey(0)
    kx, ky, kw, kb, kperm = jax.random.split(key, 5)

    x = jax.random.normal(kx, (bs, feat_size), dtype=jnp.float32)
    y = jax.random.normal(ky, (bs, feat_size), dtype=jnp.float32)

    # nn.Bilinear(feat, feat, 1) parameters: weight (1, feat, feat), bias (1,),
    # uniform(-1/sqrt(feat), 1/sqrt(feat)) (deterministic here).
    bound = 1.0 / (feat_size ** 0.5)
    weight = jax.random.uniform(kw, (1, feat_size, feat_size),
                                minval=-bound, maxval=bound, dtype=jnp.float32)
    bias = jax.random.uniform(kb, (1,), minval=-bound, maxval=bound,
                              dtype=jnp.float32)

    loss = contrast_loss(x, y, weight, bias, kperm, block_b=8)
    loss = jax.block_until_ready(loss)

    ref = jax.block_until_ready(_reference(x, y, weight, bias, kperm))
    assert jnp.allclose(loss, ref, atol=2e-4, rtol=2e-4), (loss, ref)

    print("KERNEL_OK")
</pallas_src>

<mosaic_0001>
module attributes {stable_mosaic.version = 11 : i64} {
  func.func @contrast_loss_kernel(%arg0: i32, %arg1: i32, %arg2: memref<8x128xbf16, #tpu.memory_space<vmem>>, %arg3: memref<8x128xbf16, #tpu.memory_space<vmem>>, %arg4: memref<8x128xbf16, #tpu.memory_space<vmem>>, %arg5: memref<128x128xbf16, #tpu.memory_space<vmem>>, %arg6: memref<1x1xf32, #tpu.memory_space<smem>>, %arg7: memref<1x8x128xf32, #tpu.memory_space<vmem>>) attributes {dimension_semantics = [#tpu.dimension_semantics<parallel>, #tpu.dimension_semantics<arbitrary>], iteration_bounds = array<i64: 2, 2>, scalar_prefetch = 0 : i64, scratch_operands = 0 : i64, tpu.core_type = #tpu.core_type<tc>, window_params = [{transform_indices = @transform_0, window_bounds = array<i64: 8, 128>}, {transform_indices = @transform_1, window_bounds = array<i64: 8, 128>}, {transform_indices = @transform_2, window_bounds = array<i64: 8, 128>}, {pipeline_mode = #tpu.pipeline_mode<synchronous>, transform_indices = @transform_3, window_bounds = array<i64: 128, 128>}, {transform_indices = @transform_4, window_bounds = array<i64: 1, 1>}, {transform_indices = @transform_5, window_bounds = array<i64: 1, 8, 128>}]} {
    %c0_i32 = arith.constant 0 : i32
    %0 = arith.cmpi eq, %arg1, %c0_i32 : i32
    %1 = arith.extui %0 : i1 to i32
    %c0_i32_0 = arith.constant 0 : i32
    %2 = arith.cmpi ne, %1, %c0_i32_0 : i32
    scf.if %2 {
      %cst_24 = arith.constant 0.000000e+00 : f32
      %59 = vector.broadcast %cst_24 : f32 to vector<1x8x128xf32>
      %c0_25 = arith.constant 0 : index
      %c0_26 = arith.constant 0 : index
      %c0_27 = arith.constant 0 : index
      %60 = vector.load %arg7[%c0_25, %c0_26, %c0_27] : memref<1x8x128xf32, #tpu.memory_space<vmem>>, vector<1x8x128xf32>
      tpu.vector_store %arg7[%c0_25, %c0_26, %c0_27], %59 {strides = array<i32>} : memref<1x8x128xf32, #tpu.memory_space<vmem>>, vector<1x8x128xf32>,
    } else {
    }
    %c0 = arith.constant 0 : index
    %c0_1 = arith.constant 0 : index
    %3 = vector.load %arg2[%c0, %c0_1] : memref<8x128xbf16, #tpu.memory_space<vmem>>, vector<8x128xbf16>
    %c0_2 = arith.constant 0 : index
    %c0_3 = arith.constant 0 : index
    %4 = vector.load %arg5[%c0_2, %c0_3] : memref<128x128xbf16, #tpu.memory_space<vmem>>, vector<128x128xbf16>
    %cst = arith.constant dense<0.000000e+00> : vector<8x128xf32>
    %5 = tpu.matmul %3, %4, %cst {dimension_numbers = #tpu.dot_dimension_numbers<[1], [0], [0], [1], [0, 0, 1, 1], [], []>} : vector<8x128xbf16>, vector<128x128xbf16>, vector<8x128xf32> -> vector<8x128xf32>
    %c0_4 = arith.constant 0 : index
    %c0_5 = arith.constant 0 : index
    %6 = vector.load %arg3[%c0_4, %c0_5] : memref<8x128xbf16, #tpu.memory_space<vmem>>, vector<8x128xbf16>
    %7 = arith.extf %6 : vector<8x128xbf16> to vector<8x128xf32>
    %c0_6 = arith.constant 0 : index
    %c0_7 = arith.constant 0 : index
    %8 = vector.load %arg4[%c0_6, %c0_7] : memref<8x128xbf16, #tpu.memory_space<vmem>>, vector<8x128xbf16>
    %9 = arith.extf %8 : vector<8x128xbf16> to vector<8x128xf32>
    %c0_8 = arith.constant 0 : index
    %c0_9 = arith.constant 0 : index
    %10 = memref.load %arg6[%c0_8, %c0_9] : memref<1x1xf32, #tpu.memory_space<smem>>
    %11 = arith.mulf %5, %7 : vector<8x128xf32>
    %cst_10 = arith.constant dense<0.000000e+00> : vector<8xf32>
    %12 = vector.multi_reduction <add>, %11, %cst_10 [1] : vector<8x128xf32> to vector<8xf32>
    %13 = vector.shape_cast %12 : vector<8xf32> to vector<8x1xf32>
    %14 = vector.broadcast %10 : f32 to vector<8x1xf32>
    %15 = arith.addf %13, %14 : vector<8x1xf32>
    %16 = arith.mulf %5, %9 : vector<8x128xf32>
    %cst_11 = arith.constant dense<0.000000e+00> : vector<8xf32>
    %17 = vector.multi_reduction <add>, %16, %cst_11 [1] : vector<8x128xf32> to vector<8xf32>
    %18 = vector.shape_cast %17 : vector<8xf32> to vector<8x1xf32>
    %19 = vector.broadcast %10 : f32 to vector<8x1xf32>
    %20 = arith.addf %18, %19 : vector<8x1xf32>
    %c2_i32 = arith.constant 2 : i32
    %21 = arith.muli %arg0, %c2_i32 : i32
    %22 = arith.addi %21, %arg1 : i32
    %23 = tpu.iota {dimensions = array<i32: 0>} : vector<8x1xi32>
    %c8_i32 = arith.constant 8 : i32
    %24 = arith.muli %22, %c8_i32 : i32
    %25 = vector.broadcast %24 : i32 to vector<8x1xi32>
    %26 = arith.addi %23, %25 : vector<8x1xi32>
    %c30_i32 = arith.constant 30 : i32
    %27 = vector.broadcast %c30_i32 : i32 to vector<8x1xi32>
    %28 = arith.cmpi slt, %26, %27 : vector<8x1xi32>
    %29 = arith.extui %28 : vector<8x1xi1> to vector<8x1xi32>
    %30 = arith.sitofp %29 : vector<8x1xi32> to vector<8x1xf32>
    %cst_12 = arith.constant 0.000000e+00 : f32
    %31 = vector.broadcast %cst_12 : f32 to vector<8x1xf32>
    %32 = arith.subf %31, %15 : vector<8x1xf32>
    %cst_13 = arith.constant 0.000000e+00 : f32
    %33 = vector.broadcast %cst_13 : f32 to vector<8x1xf32>
    %34 = arith.maximumf %32, %33 : vector<8x1xf32>
    %35 = math.absf %32 : vector<8x1xf32>
    %cst_14 = arith.constant 0.000000e+00 : f32
    %36 = vector.broadcast %cst_14 : f32 to vector<8x1xf32>
    %37 = arith.subf %36, %35 : vector<8x1xf32>
    %38 = math.exp %37 : vector<8x1xf32>
    %39 = math.log1p %38 : vector<8x1xf32>
    %40 = arith.addf %34, %39 : vector<8x1xf32>
    %cst_15 = arith.constant 0.000000e+00 : f32
    %41 = vector.broadcast %cst_15 : f32 to vector<8x1xf32>
    %42 = arith.maximumf %20, %41 : vector<8x1xf32>
    %43 = math.absf %20 : vector<8x1xf32>
    %cst_16 = arith.constant 0.000000e+00 : f32
    %44 = vector.broadcast %cst_16 : f32 to vector<8x1xf32>
    %45 = arith.subf %44, %43 : vector<8x1xf32>
    %46 = math.exp %45 : vector<8x1xf32>
    %47 = math.log1p %46 : vector<8x1xf32>
    %48 = arith.addf %42, %47 : vector<8x1xf32>
    %49 = arith.addf %40, %48 : vector<8x1xf32>
    %50 = arith.mulf %49, %30 : vector<8x1xf32>
    %51 = vector.shape_cast %50 : vector<8x1xf32> to vector<1x8x1xf32>
    %cst_17 = arith.constant dense<0.000000e+00> : vector<1xf32>
    %52 = vector.multi_reduction <add>, %51, %cst_17 [1, 2] : vector<1x8x1xf32> to vector<1xf32>
    %53 = vector.shape_cast %52 : vector<1xf32> to vector<1x1x1xf32>
    %54 = vector.extract %53[0, 0, 0] : f32 from vector<1x1x1xf32>
    %c0_18 = arith.constant 0 : index
    %c0_19 = arith.constant 0 : index
    %c0_20 = arith.constant 0 : index
    %55 = vector.load %arg7[%c0_18, %c0_19, %c0_20] : memref<1x8x128xf32, #tpu.memory_space<vmem>>, vector<1x8x128xf32>
    %56 = vector.broadcast %54 : f32 to vector<1x8x128xf32>
    %57 = arith.addf %55, %56 : vector<1x8x128xf32>
    %c0_21 = arith.constant 0 : index
    %c0_22 = arith.constant 0 : index
    %c0_23 = arith.constant 0 : index
    %58 = vector.load %arg7[%c0_21, %c0_22, %c0_23] : memref<1x8x128xf32, #tpu.memory_space<vmem>>, vector<1x8x128xf32>
    tpu.vector_store %arg7[%c0_21, %c0_22, %c0_23], %57 {strides = array<i32>} : memref<1x8x128xf32, #tpu.memory_space<vmem>>, vector<1x8x128xf32>,
    return
  }
  func.func @transform_0(%arg0: i32, %arg1: i32) -> (i32, i32) {
    %c2_i32 = arith.constant 2 : i32
    %0 = arith.muli %arg0, %c2_i32 : i32
    %1 = arith.addi %0, %arg1 : i32
    %c0_i32 = arith.constant 0 : i32
    %c0_i32_0 = arith.constant 0 : i32
    return %1, %c0_i32 : i32, i32
  }
  func.func @transform_1(%arg0: i32, %arg1: i32) -> (i32, i32) {
    %c2_i32 = arith.constant 2 : i32
    %0 = arith.muli %arg0, %c2_i32 : i32
    %1 = arith.addi %0, %arg1 : i32
    %c0_i32 = arith.constant 0 : i32
    %c0_i32_0 = arith.constant 0 : i32
    return %1, %c0_i32 : i32, i32
  }
  func.func @transform_2(%arg0: i32, %arg1: i32) -> (i32, i32) {
    %c2_i32 = arith.constant 2 : i32
    %0 = arith.muli %arg0, %c2_i32 : i32
    %1 = arith.addi %0, %arg1 : i32
    %c0_i32 = arith.constant 0 : i32
    %c0_i32_0 = arith.constant 0 : i32
    return %1, %c0_i32 : i32, i32
  }
  func.func @transform_3(%arg0: i32, %arg1: i32) -> (i32, i32) {
    %c0_i32 = arith.constant 0 : i32
    %c0_i32_0 = arith.constant 0 : i32
    %c0_i32_1 = arith.constant 0 : i32
    return %c0_i32, %c0_i32_0 : i32, i32
  }
  func.func @transform_4(%arg0: i32, %arg1: i32) -> (i32, i32) {
    %c0_i32 = arith.constant 0 : i32
    %c0_i32_0 = arith.constant 0 : i32
    %c0_i32_1 = arith.constant 0 : i32
    return %c0_i32, %c0_i32_0 : i32, i32
  }
  func.func @transform_5(%arg0: i32, %arg1: i32) -> (i32, i32, i32) {
    %c0_i32 = arith.constant 0 : i32
    %c0_i32_0 = arith.constant 0 : i32
    %c0_i32_1 = arith.constant 0 : i32
    return %arg0, %c0_i32, %c0_i32_0 : i32, i32, i32
  }
}

</mosaic_0001>

<bundles_post_ra>
// kernel: tpu_custom_call.1
= control target key start
LH: loop header
LB: loop body
LE: loop exit
PB: predicated region body
PF: predicated region fallthrough
CT: control target
= control target key end

     0   :  { %s1577_s0 = inlined_call_operand.hbm [shape: bf16[32,128], index: 0, kind: input, shape index: {}]   ;;  %s1578_s1 = inlined_call_operand.hbm [shape: bf16[32,128], index: 1, kind: input, shape index: {}]   ;;  %s1579_s2 = inlined_call_operand.hbm [shape: bf16[32,128], index: 2, kind: input, shape index: {}]   ;;  %s1580_s3 = inlined_call_operand.hbm [shape: bf16[128,128], index: 3, kind: input, shape index: {}]   ;;  %s1581_s4 = inlined_call_operand.<no memory space> [shape: f32[1,1], index: 4, kind: input, shape index: {}]   ;;  %s1582_s5 = inlined_call_operand.hbm [shape: f32[2,8,128], index: 5, kind: output, shape index: {}]  }
   0x1   :  { %1605 = sst [smem:[#allocation28_spill]] %s1578_s1 }
   0x2   :  { %1606 = sst [smem:[#allocation29_spill]] %s1582_s5 }
   0x3   :  { %10 = sst [smem:[#allocation2]] %s1581_s4 }
   0x4   :  { %11 = vsyncpa [#allocation4], 0 }
   0x5   :  { %13 = vsyncpa [#allocation4 + $0x1], 0 }
   0x6   :  { %14 = vsyncpa [#allocation7], 0 }
   0x7   :  { %16 = vsyncpa [#allocation7 + $0x1], 0 }
   0x8   :  { %17 = vsyncpa [#allocation10], 0 }
   0x9   :  { %18 = vsyncpa [#allocation5], 0 }
   0xa   :  { %20 = vsyncpa [#allocation5 + $0x1], 0  ;;  %s1210_s20 = smov 0   ;;  %s1212_s21 = smov 0  }
   0xb   :  { %s1214_s22 = smov 0   ;;  %s1216_s23 = smov 0  }
   0xc   :  { %s1218_s24 = smov 0   ;;  %s1220_s25 = smov 0  }
   0xd   :  { %s1222_s4 = smov 0   ;;  %s1224_s26 = smov 0  }
   0xe   :  { %s1226_s27 = smov 0   ;;  %s1228_s28 = smov 0  }
   0xf   :  { %s1230_s29 = smov 0  }
  0x10 LB: > { %1607 = sst [smem:[#allocation16_spill]] %s1125_s20  ;;  %s35_s30 = sadd.s32 1, %s1157_s27  ;;  %s1165_s29 = sphi %s1230_s29, %s26_s29   ;;  %s1161_s28 = sphi %s1228_s28, %s1650_s28   ;;  %s1157_s27 = sphi %s1226_s27, %s1649_s27   ;;  %s1153_s26 = sphi %s1224_s26, %s1648_s26   ;;  %s1149_s4 = sphi %s1222_s4, %s1656_s4   ;;  %s1145_s25 = sphi %s1220_s25, %s1655_s25   ;;  %s1141_s24 = sphi %s1218_s24, %s1654_s24   ;;  %s1137_s23 = sphi %s1216_s23, %s1653_s23   ;;  %s1133_s22 = sphi %s1214_s22, %s1645_s22   ;;  %s1129_s21 = sphi %s1212_s21, %s1652_s21   ;;  %s1125_s20 = sphi %s1210_s20, %s1651_s20  }
  0x11   : > { %1608 = sst [smem:[#allocation17_spill]] %s1133_s22  ;;  %s38_s6 = sadd.s32 1, %s1161_s28 }
  0x12   : > { %1609 = sst [smem:[#allocation18_spill]] %s1153_s26  ;;  %p36_p0 = scmp.ge.s32.totalorder %s35_s30, 2 }
  0x13   : > { %1610 = sst [smem:[#allocation19_spill]] %s1157_s27  ;;  %s702_s7 = sshll.u32 %s1161_s28, 1 }
  0x14   : > { %1611 = sst [smem:[#allocation20_spill]] %s1161_s28  ;;  %s43_s8 = sadd.s32 %s1157_s27, %s702_s7 }
  0x15   : > { %1612 = sst [smem:[#allocation21_spill]] %s1165_s29  ;;  %s49_s9 = sadd.s32 1, %s1145_s25 }
  0x16   : > { %s1658_s30 = smov (%p36_p0, %s35_s30), 0  ;;  %s1660_s6 = smov (!%p36_p0, %s38_s6), %s1161_s28 }
  0x17   : > { %1613 = sst [smem:[#allocation22_spill]] %s1658_s30  ;;  %p56_p1 = scmp.ne.s32.totalorder %s1145_s25, %s1141_s24 }
  0x18   : > { %p57_p2 = scmp.eq.s32.totalorder %s1165_s29, 0  ;;  %p40_p3 = scmp.ge.s32.totalorder %s1660_s6, 2 }
  0x19   : > { %s177_s10 = sadd.s32 1, %s1133_s22  ;;  %p804_p5 = scmp.lt.s32.totalorder %s1165_s29, 4 }
  0x1a   : > { %p1277_p4 = por %p57_p2, %p56_p1  ;;  %s1662_s6 = smov (%p40_p3, %s1660_s6), 0 }
  0x1b   : > { %1615 = sst [smem:[#allocation23_spill]] %s1662_s6  ;;  %s1584_s12 = sand.u32 1, %s1145_s25  }
  0x1c   : > { %s703_s13 = sshll.u32 %s1662_s6, 1  ;;  %s174_s14 = ssub.s32 %s1161_s28, %s1662_s6 }
  0x1d   : > { %s45_s15 = sadd.s32 %s703_s13, %s1658_s30  ;;  %p175_p6 = scmp.eq.s32.totalorder %s174_s14, 0 }
  0x1e   : > { %s46_s16 = ssub.s32 %s43_s8, %s45_s15  ;;  %s1291_s17 = sshll.u32 %s1584_s12, 2 }
  0x1f   : > { %p47_p7 = scmp.eq.s32.totalorder %s46_s16, 0  ;;  %s1293_s18 = sshll.u32 %s43_s8, 6 }
  0x20   : > { %s1296_s19 = scalar_select %p175_p6, %s1133_s22, %s177_s10  }
  0x21   : > { %s1299_s7 = scalar_select %p47_p7, %s1145_s25, %s49_s9  }
  0x22   : > { %1616 = sst [smem:[#allocation24_spill]] %s1296_s19  ;;  %p1303_p8 = pnand %p804_p5, %p1277_p4 }
  0x23   : > { %1617 = sst [smem:[#allocation25_spill]] %s1299_s7  ;;  %s250_s13 = sand.u32 1, %s1165_s29  }
  0x24   : > { %s1618_s27 = scalar_select %p1303_p8, 1, 0 }
  0x25   : > { %s1619_s1 = sld [smem:[#allocation28_spill]]  ;;  %s254_s8 = scalar_lea.vmem [#allocation6], %s1291_s17 }
  0x26   : > { %s263_s10 = sshll.u32 %s254_s8, 4  ;;  %s1317_s9 = scalar_lea.sflag [#allocation7], %s250_s13  ;;  %s1315_s10 = int_to_ptr.vmem [resolvable:$true] %s263_s10 }
  0x27   : > { %p1323_p10 = pneg %p1303_p8 }
  0x29   : > { %s1620_s16 = scalar_select %p1323_p10, 1, 0 }
  0x2b   : > { %s1312_s12 = scalar_lea.hbm %s1619_s1, %s1293_s18  ;;  %s922_s6 = scalar_lea.hbm %s1619_s1, 256 }
  0x2c   : > { %s917_s11 = scalar_lea.hbm %s1312_s12, 64  ;;  %p923_p13 = scmp.lt.u32.totalorder %s1312_s12, %s1619_s1 }
  0x2d   : > { %p918_p9 = scmp.ne.s32.totalorder %s1312_s12, %s917_s11  ;;  %p924_p0 = scmp.lt.u32.totalorder %s922_s6, %s917_s11 }
  0x2e   : > { %p926_p2 = scmp.lt.u32.totalorder %s917_s11, %s1312_s12 }
  0x2f   : > { %p920_p11 = pnand %p1323_p10, %p918_p9  ;;  %p925_p1 = por %p924_p0, %p923_p13 }
  0x31   : > { %p921_p12 = pneg %p920_p11  ;;  %p927_p3 = por %p926_p2, %p925_p1 }
  0x33   : > { %p928_p4 = pnand %p927_p3, %p921_p12 }
  0x35   : > { %931 = shalt.err (!%p928_p4)
}
  0x36   : > { %s932_s13 = scalar_lea.vmem %s1315_s10, 64  ;;  %s1167_s14 = smov [#allocation6]  }
  0x37   : > { %p933_p5 = scmp.ne.s32.totalorder %s1315_s10, %s932_s13  ;;  %s937_s15 = sshll.u32 %s1167_s14, 4  ;;  %s938_s15 = int_to_ptr.vmem [resolvable:$false] %s937_s15 }
  0x38   : > { %s939_s30 = scalar_lea.vmem %s938_s15, 128  ;;  %p940_p9 = scmp.lt.s32.totalorder %s1315_s10, %s938_s15 }
  0x39   : > { %p935_p6 = pnand %p933_p5, %p1323_p10  ;;  %p941_p11 = scmp.lt.s32.totalorder %s939_s30, %s932_s13 }
  0x3b   : > { %p936_p7 = pneg %p935_p6  ;;  %p942_p13 = por %p941_p11, %p940_p9 }
  0x3d   : > { %p943_p0 = pnand %p942_p13, %p936_p7 }
  0x3f   : > { %946 = shalt.err (!%p943_p0)
}
  0x40   : > { %795 = dma.hbm_to_vmem [thread:$0]  (!%p1303_p8), %s1312_s12, 64, %s1315_s10, %s1317_s9  }
  0x41   : > { %s1348_s6 = sadd.s32 4294967295, %s1165_s29   ;;  %s701_s11 = sadd.s32 4294967294, %s1165_s29  }
  0x42   : > { %p62_p12 = scmp.ne.s32.totalorder %s1141_s24, %s1137_s23  ;;  %p1591_p1 = scmp.eq.s32.totalorder %s1348_s6, 0 }
  0x43   : > { %p187_p2 = scmp.ne.s32.totalorder %s1133_s22, %s1129_s21  ;;  %p188_p3 = scmp.eq.s32.totalorder %s1348_s6, 3 }
  0x44   : > { %p1359_p4 = por %p1591_p1, %p62_p12  ;;  %p193_p5 = scmp.ne.s32.totalorder %s1129_s21, %s1125_s20 }
  0x45   : > { %p1365_p6 = por %p188_p3, %p187_p2  ;;  %p194_p7 = scmp.eq.s32.totalorder %s701_s11, 3 }
  0x46   : > { %s1621_s8 = scalar_select %p1359_p4, 1, 0 }
  0x47   : > { %s1622_s12 = scalar_select %p1365_p6, 1, 0 }
  0x48   : > { %p708_p9 = scmp.ge.s32.totalorder %s1165_s29, 1  ;;  %p201_p11 = scmp.lt.s32.totalorder %s1165_s29, 5 }
  0x49   : > { %1623 = sst [smem:[#allocation26_spill]] %s1622_s12  ;;  %p1371_p13 = por %p194_p7, %p193_p5 }
  0x4a   : > { %p1375_p0 = pnand %p708_p9, %p201_p11  ;;  %s1168_s13 = smov [#allocation9]  }
  0x4b   : > { %s1624_s23 = scalar_select %p1371_p13, 1, 0 }
  0x4c   : > { %s1626_s10 = scalar_select %p1375_p0, 1, 0 }
  0x4d   : > { %1625 = sst [smem:[#allocation27_spill]] %s1624_s23  ;;  %s213_s14 = sshll.u32 %s1168_s13, 4  ;;  %s214_s14 = int_to_ptr.vmem [resolvable:$true] %s213_s14 }
  0x4e   : > { %p785_p12 = pneg %p1375_p0  ;;  %s1391_s1 = scalar_lea.hbm %s1577_s0, %s1293_s18 }
  0x4f   : > { %s234_s28 = scalar_lea.vmem [#allocation3], %s1291_s17  ;;  %s947_s22 = scalar_lea.hbm %s1580_s3, 1024 }
  0x50   : > { %p1383_p2 = pnand %p785_p12, %p1591_p1  ;;  %s243_s7 = sshll.u32 %s234_s28, 4  ;;  %s1394_s7 = int_to_ptr.vmem [resolvable:$true] %s243_s7 }
  0x51   : > { %p948_p3 = scmp.ne.s32.totalorder %s1580_s3, %s947_s22  ;;  %p954_p11 = scmp.lt.u32.totalorder %s947_s22, %s1580_s3 }
  0x52   : > { %p949_p5 = pneg %p1383_p2 }
  0x54   : > { %p950_p7 = pnand %p949_p5, %p948_p3 }
  0x56   : > { %p951_p9 = pneg %p950_p7 }
  0x58   : > { %p956_p12 = pnand %p954_p11, %p951_p9 }
  0x5a   : > { %959 = shalt.err (!%p956_p12)
}
  0x5b   : > { %s960_s28 = scalar_lea.vmem %s214_s14, 1024  ;;  %p968_p4 = scmp.lt.s32.totalorder %s214_s14, %s214_s14 }
  0x5c   : > { %p961_p1 = scmp.ne.s32.totalorder %s214_s14, %s960_s28  ;;  %p969_p0 = scmp.lt.s32.totalorder %s960_s28, %s960_s28 }
  0x5e   : > { %p963_p13 = pnand %p961_p1, %p949_p5  ;;  %p970_p8 = por %p969_p0, %p968_p4 }
  0x60   : > { %p964_p6 = pneg %p963_p13 }
  0x62   : > { %p971_p10 = pnand %p970_p8, %p964_p6 }
  0x64   : > { %974 = shalt.err (!%p971_p10)
}
  0x65   : > { %s1169_s20 = smov 64   ;;  %s1170_s22 = smov 4  }
  0x66   : > { %788 = dma.hbm_to_vmem [thread:$0]  (!%p1383_p2), %s1580_s3, 1024, %s214_s14, [#allocation10], %s1169_s20, %s1169_s20, %s1170_s22  }
  0x67   : > { %s1628_s13 = sand.u32 1, %s1145_s25   ;;  %s975_s11 = scalar_lea.hbm %s1391_s1, 64 }
  0x68   : > { %s231_s30 = scalar_lea.sflag [#allocation4], %s1628_s13  ;;  %p976_p1 = scmp.ne.s32.totalorder %s1391_s1, %s975_s11 }
  0x69   : > { %p1629_p8 = scmp.ne.s32.totalorder %s1620_s16, 0  ;;  %s980_s5 = scalar_lea.hbm %s1577_s0, 256 }
  0x6a   : > { %p981_p6 = scmp.lt.u32.totalorder %s1391_s1, %s1577_s0  ;;  %p982_p13 = scmp.lt.u32.totalorder %s980_s5, %s975_s11 }
  0x6b   : > { %p978_p10 = pnand %p976_p1, %p1629_p8  ;;  %p984_p3 = scmp.lt.u32.totalorder %s975_s11, %s1391_s1 }
  0x6c   : > { %p983_p0 = por %p982_p13, %p981_p6 }
  0x6d   : > { %p979_p4 = pneg %p978_p10 }
  0x6e   : > { %p985_p5 = por %p984_p3, %p983_p0 }
  0x70   : > { %p986_p2 = pnand %p985_p5, %p979_p4 }
  0x72   : > { %989 = shalt.err (!%p986_p2)
}
  0x73   : > { %s990_s14 = scalar_lea.vmem %s1394_s7, 64  ;;  %s1171_s29 = smov [#allocation3]  }
  0x74   : > { %p991_p7 = scmp.ne.s32.totalorder %s1394_s7, %s990_s14  ;;  %s995_s15 = sshll.u32 %s1171_s29, 4  ;;  %s996_s15 = int_to_ptr.vmem [resolvable:$false] %s995_s15 }
  0x75   : > { %s997_s26 = scalar_lea.vmem %s996_s15, 128  ;;  %p998_p12 = scmp.lt.s32.totalorder %s1394_s7, %s996_s15 }
  0x76   : > { %p993_p9 = pnand %p991_p7, %p1629_p8  ;;  %p999_p1 = scmp.lt.s32.totalorder %s997_s26, %s990_s14 }
  0x78   : > { %p994_p11 = pneg %p993_p9  ;;  %p1000_p10 = por %p999_p1, %p998_p12 }
  0x7a   : > { %p1001_p6 = pnand %p1000_p10, %p994_p11 }
  0x7c   : > { %1004 = shalt.err (!%p1001_p6)
}
  0x7d   : > { %p1630_p4 = scmp.ne.s32.totalorder %s1618_s27, 0  ;;  %s1439_s20 = scalar_lea.hbm %s1579_s2, %s1293_s18 }
  0x7e   : > { %s274_s22 = scalar_lea.vmem [#allocation8], %s1291_s17  ;;  %s1005_s23 = scalar_lea.hbm %s1439_s20, 64 }
  0x7f   : > { %792 = dma.hbm_to_vmem [thread:$0]  (!%p1630_p4), %s1391_s1, 64, %s1394_s7, %s231_s30  }
  0x80   : > { %s283_s19 = sshll.u32 %s274_s22, 4  ;;  %p1006_p13 = scmp.ne.s32.totalorder %s1439_s20, %s1005_s23  ;;  %s284_s19 = int_to_ptr.vmem [resolvable:$true] %s283_s19 }
  0x81   : > { %s1010_s1 = scalar_lea.hbm %s1579_s2, 256  ;;  %p1011_p5 = scmp.lt.u32.totalorder %s1439_s20, %s1579_s2 }
  0x82   : > { %p1008_p0 = pnand %p1006_p13, %p1629_p8  ;;  %p1012_p2 = scmp.lt.u32.totalorder %s1010_s1, %s1005_s23 }
  0x83   : > { %p1014_p9 = scmp.lt.u32.totalorder %s1005_s23, %s1439_s20 }
  0x84   : > { %p1009_p3 = pneg %p1008_p0  ;;  %p1013_p7 = por %p1012_p2, %p1011_p5 }
  0x86   : > { %p1015_p11 = por %p1014_p9, %p1013_p7 }
  0x88   : > { %p1016_p12 = pnand %p1015_p11, %p1009_p3 }
  0x8a   : > { %1019 = shalt.err (!%p1016_p12)
}
  0x8b   : > { %s1020_s17 = scalar_lea.vmem %s284_s19, 64  ;;  %s1172_s18 = smov [#allocation8]  }
  0x8c   : > { %p1021_p1 = scmp.ne.s32.totalorder %s284_s19, %s1020_s17  ;;  %s1025_s28 = sshll.u32 %s1172_s18, 4  ;;  %s1026_s28 = int_to_ptr.vmem [resolvable:$false] %s1025_s28 }
  0x8d   : > { %s1027_s14 = scalar_lea.vmem %s1026_s28, 128  ;;  %p1028_p13 = scmp.lt.s32.totalorder %s284_s19, %s1026_s28 }
  0x8e   : > { %p1023_p10 = pnand %p1021_p1, %p1629_p8  ;;  %p1029_p0 = scmp.lt.s32.totalorder %s1027_s14, %s1020_s17 }
  0x90   : > { %p1024_p6 = pneg %p1023_p10  ;;  %p1030_p4 = por %p1029_p0, %p1028_p13 }
  0x92   : > { %p1031_p2 = pnand %p1030_p4, %p1024_p6 }
  0x94   : > { %1034 = shalt.err (!%p1031_p2)
}
  0x95   : > { %p1631_p5 = scmp.ne.s32.totalorder %s1618_s27, 0  ;;  %p1632_p3 = scmp.ne.s32.totalorder %s1626_s10, 0 }
  0x96   : > { %s294_s16 = sand.u32 (!%p1632_p3), 1, %s1141_s24   ;;  %p1633_p8 = scmp.ne.s32.totalorder (!%p1632_p3), %s1621_s8, 0 }
  0x97   : > { %798 = dma.hbm_to_vmem [thread:$0]  (!%p1631_p5), %s1439_s20, 64, %s284_s19, %s1317_s9  }
  0x98   : > { %292 = sbr.rel (%p1632_p3) target bundleno = 831 (0x33f), region = 40  ;;  %s1463_s29 = sshll.u32 (!%p1632_p3), %s294_s16, 2 }
  0x99   : > { %s295_s15 = scalar_lea.sflag (!%p1632_p3), [#allocation4], %s294_s16  ;;  %s298_s26 = scalar_lea.vmem (!%p1632_p3), [#allocation3], %s1463_s29 }
  0x9f   : > { %1108 = dma.done.wait (%p1633_p8), %s295_s15, 64  }
  0xa0   : > { %1110 = vsyncadd (%p1633_p8), %s295_s15, 4294967232  ;;  %s303_s27 = sand.u32 1, %s1348_s6   ;;  %s307_s10 = scalar_lea.vmem [#allocation6], %s1463_s29 }
  0xa1   : > { %s304_s9 = scalar_lea.sflag [#allocation7], %s303_s27 }
  0xa2   : > { %1112 = dma.done.wait (%p1633_p8), %s304_s9, 128  }
  0xa3   : > { %1114 = vsyncadd (%p1633_p8), %s304_s9, 4294967168  ;;  %s316_s5 = scalar_lea.vmem [#allocation8], %s1463_s29  ;;  %p1634_p4 = scmp.eq.s32.totalorder %s1348_s6, 0 }
  0xa5   : > { %1116 = dma.done.wait (%p1634_p4), [#allocation10], 1024   ;;  %p1635_p7 = pmov %p1634_p4 }
  0xa6   : > { %s354_s12 = sand.u32 1, %s1129_s21   ;;  %p726_p9 = scmp.ne.s32.totalorder %s1149_s4, 0 }
  0xa7   : > { %1118 = vsyncadd (%p1635_p7), [#allocation10], 4294966272  ;;  %s725_s20 = sshll.u32 %s354_s12, 3  ;;  %v1173_v0 = vmov (!%p726_p9), 0.0  }
  0xa8   : > { %s1484_s22 = scalar_lea.vmem [#allocation11], %s725_s20  ;;  %367 = sbr.rel (%p726_p9) target bundleno = 175 (0xaf), region = 60 }
  0xa9   : > { %368 = vst [vmem:[%s1484_s22] sm:$0xff] (!%p726_p9), %v1173_v0 }
  0xaf PF: > { %v901_v1 = vld [vmem:[#allocation9] sm:$0xff]   ;;  %v1174_v2 = vmov 0.0   ;;  %v902_v3 = vld [vmem:[#allocation9 + $0x8] sm:$0xff]   ;;  %vm1175_vm0 = vmmov 0   ;;  %v903_v4 = vld [vmem:[#allocation9 + $0x10] sm:$0xff]   ;;  %s478_s6 = sld [smem:[#allocation2]]  ;;  %v490_v37 = vlaneseq }
  0xb0   : > { %751 = vmatprep.subr.bf16.mxu0 %v1174_v2  ;;  %767 = vmatprep.mubr.msk.bf16.mxu0 %vm1175_vm0, %v1174_v2  ;;  %v904_v5 = vld [vmem:[#allocation9 + $0x18] sm:$0xff]   ;;  %v905_v6 = vld [vmem:[#allocation9 + $0x20] sm:$0xff]   ;;  %v906_v7 = vld [vmem:[#allocation9 + $0x28] sm:$0xff]   ;;  %s1636_s8 = sld [smem:[#allocation18_spill]]  ;;  %vm531_vm4 = vcmask 7168   ;;  %s560_s1 = sshll.u32 %s1484_s22, 4  ;;  %s1514_s1 = int_to_ptr.vmem [resolvable:$true] %s560_s1 }
  0xb1   : > { %752 = vmatpush3.bf16.msra.mxu0 %v901_v1  ;;  %v907_v8 = vld [vmem:[#allocation9 + $0x30] sm:$0xff]   ;;  %v908_v9 = vld [vmem:[#allocation9 + $0x38] sm:$0xff]   ;;  %v369_v10 = vld [vmem:[%s298_s26] sm:$0xf]  ;;  %v491_v40 = vshrl.u32 %v490_v37, 7  ;;  %s1638_s18 = sld [smem:[#allocation29_spill]] }
  0xb2   : > { %753 = vmatprep.subr.bf16.mxu0 %v1174_v2  ;;  %v474_v11 = vld [vmem:[%s307_s10] sm:$0xf]  ;;  %v476_v13 = vld [vmem:[%s316_s5] sm:$0xf]  ;;  %s547_s14 = scalar_lea.sflag [#allocation5], %s354_s12  ;;  %s1035_s16 = scalar_lea.vmem %s1514_s1, 128 }
  0xb3   : > { %v475_v12 = vunpack.c.l.bf16 %v474_v11  ;;  %v477_v17 = vunpack.c.l.bf16 %v476_v13  ;;  %p1036_p11 = scmp.ne.s32.totalorder %s1514_s1, %s1035_s16  ;;  %s1176_s29 = smov [#allocation11]  }
  0xb4   : > { %s1039_s15 = sshll.u32 %s1176_s29, 4  ;;  %s1040_s15 = int_to_ptr.vmem [resolvable:$false] %s1039_s15 }
  0xb5   : > { %754 = vmatpush3.bf16.msra.mxu0 %v902_v3  ;;  %v482_v21 = vstv %s478_s6  ;;  %s1041_s26 = scalar_lea.vmem %s1040_s15, 256  ;;  %p1042_p6 = scmp.lt.s32.totalorder %s1514_s1, %s1040_s15 }
  0xb6   : > { %755 = vmatprep.subr.bf16.mxu0 %v1174_v2  ;;  %s735_s19 = sshll.u32 %s1636_s8, 1  ;;  %s739_s11 = sshll.u32 %s1636_s8, 7 }
  0xb7   : > { %s489_s23 = sadd.s32 %s1149_s4, %s735_s19  ;;  %s1637_s4 = sld [smem:[#allocation26_spill]] }
  0xb8   : > { %s736_s13 = sshll.u32 %s489_s23, 3  ;;  %s1512_s28 = scalar_lea.hbm %s1638_s18, %s739_s11 }
  0xb9   : > { %756 = vmatpush3.bf16.msra.mxu0 %v903_v4  ;;  %v493_v42 = vstv %s736_s13  ;;  %p1043_p13 = scmp.lt.s32.totalorder %s1041_s26, %s1035_s16 }
  0xba   : > { %757 = vmatprep.subr.bf16.mxu0 %v1174_v2  ;;  %v494_v47 = vadd.s32 %v493_v42, %v491_v40 }
  0xbb   : > { %p1044_p0 = por %p1043_p13, %p1042_p6 }
  0xbc   : > { %vm495_vm3 = vcmp.lt.s32.totalorder %v494_v47, 30 }
  0xbd   : > { %758 = vmatpush3.bf16.msra.mxu0 %v904_v5  ;;  %v737_v59 = vsel %vm495_vm3, 1.0, %v1174_v2  ;;  %p1639_p12 = scmp.ne.s32.totalorder %s1637_s4, 0 }
  0xbe   : > { %759 = vmatprep.subr.bf16.mxu0 %v1174_v2 }
  0xbf   : > { %p1037_p1 = pnand %p1036_p11, %p1639_p12 }
  0xc1   : > { %760 = vmatpush3.bf16.msra.mxu0 %v905_v6  ;;  %p1038_p10 = pneg %p1037_p1 }
  0xc2   : > { %761 = vmatprep.subr.bf16.mxu0 %v1174_v2 }
  0xc3   : > { %p1045_p2 = pnand %p1044_p0, %p1038_p10 }
  0xc5   : > { %762 = vmatpush3.bf16.msra.mxu0 %v906_v7  ;;  %v542_v7 = vld [vmem:[%s1484_s22] sm:$0xff] }
  0xc6   : > { %763 = vmatprep.subr.bf16.mxu0 %v1174_v2 }
  0xc9   : > { %764 = vmatpush3.bf16.msra.mxu0 %v907_v8 }
  0xca   : > { %765 = vmatprep.subr.bf16.mxu0 %v1174_v2 }
  0xcd   : > { %766 = vmatpush3.bf16.msra.mxu0 %v908_v9 }
  0xd0   : > { %768 = vmatmul.mubr.bf16.vlgmr.msra.gmra.mrb[0].mxu0 %v369_v10 }
 0x1a3   : > { %v468_v14 = vpop.f32.mrb[0].mxu0 }
 0x1a4   : > { %v769_v15 = vpop.f32.mrb[1].mxu0  ;;  %v479_v16 = vmul.f32 %v475_v12, %v468_v14  ;;  %v484_v20 = vmul.f32 %v477_v17, %v468_v14 }
 0x1a5   : > { %v471_v18 = vpop.f32.mrb[2].mxu0 }
 0x1a6   : > { %480 = vadd.xlane.f32.xlu0 %v479_v16  ;;  %v770_v19 = vpop.f32.mrb[3].mxu0 }
 0x1aa   : > { %485 = vadd.xlane.f32.xlu0 %v484_v20 }
 0x233   : > { %v481_v22 = vpop.xlane.xlu0 %480 }
 0x234   : > { %v483_v23 = vadd.f32 %v482_v21, %v481_v22 }
 0x236   : > { %v498_v24 = vsub.f32 0.0, %v483_v23 }
 0x237   : > { %v486_v25 = vpop.xlane.xlu0 %485 }
 0x238   : > { %v500_v26 = vand.u32 2147483647, %v498_v24  ;;  %v487_v27 = vadd.f32 %v486_v25, %v482_v21  ;;  %v499_v54 = vmax.f32 %v498_v24, 0.0 }
 0x23a   : > { %v501_v28 = vsub.f32 0.0, %v500_v26  ;;  %v515_v29 = vand.u32 2147483647, %v487_v27  ;;  %v514_v55 = vmax.f32 %v487_v27, 0.0 }
 0x23c   : > { %v502_v30 = vmul.f32 1.442695, %v501_v28  ;;  %v516_v31 = vsub.f32 0.0, %v515_v29 }
 0x23e   : > { %909 = vpow2.f32 %v502_v30  ;;  %v517_v32 = vmul.f32 1.442695, %v516_v31 }
 0x240   : > { %911 = vpow2.f32 %v517_v32 }
 0x248   : > { %v910_v33 = vpop.eup %909 }
 0x249   : > { %v504_v34 = vadd.f32 1.0, %v910_v33  ;;  %v507_v38 = vmul.f32 -0.5, %v910_v33  ;;  %v510_v43 = vand.u32 2147483647, %v910_v33 }
 0x24a   : > { %v912_v35 = vpop.eup %911 }
 0x24b   : > { %913 = vlog2.f32 %v504_v34  ;;  %v519_v36 = vadd.f32 1.0, %v912_v35  ;;  %v522_v39 = vmul.f32 -0.5, %v912_v35  ;;  %v508_v41 = vadd.f32 1.0, %v507_v38 }
 0x24c   : > { %v525_v46 = vand.u32 2147483647, %v912_v35  ;;  %vm511_vm1 = vcmp.lt.f32.partialorder %v510_v43, 0.0004427343 }
 0x24d   : > { %915 = vlog2.f32 %v519_v36  ;;  %v523_v44 = vadd.f32 1.0, %v522_v39  ;;  %v509_v49 = vmul.f32 %v910_v33, %v508_v41 }
 0x24e   : > { %vm526_vm2 = vcmp.lt.f32.partialorder %v525_v46, 0.0004427343 }
 0x24f   : > { %v524_v53 = vmul.f32 %v912_v35, %v523_v44 }
 0x255   : > { %v914_v45 = vpop.eup %913 }
 0x256   : > { %v506_v48 = vmul.f32 0.6931472, %v914_v45 }
 0x257   : > { %v916_v50 = vpop.eup %915 }
 0x258   : > { %v512_v51 = vsel %vm511_vm1, %v509_v49, %v506_v48  ;;  %v521_v52 = vmul.f32 0.6931472, %v916_v50 }
 0x259   : > { %v513_v57 = vadd.f32 %v512_v51, %v499_v54 }
 0x25a   : > { %v527_v56 = vsel %vm526_vm2, %v524_v53, %v521_v52 }
 0x25b   : > { %v528_v58 = vadd.f32 %v527_v56, %v514_v55 }
 0x25d   : > { %v529_v60 = vadd.f32 %v528_v58, %v513_v57 }
 0x25f   : > { %v530_v61 = vmul.f32 %v737_v59, %v529_v60 }
 0x261   : > { %v532_v62 = vsel %vm531_vm4, %v530_v61, 0.0 }
 0x262   : > { %533 = vadd.xlane.f32.xlu1 %v532_v62 }
 0x2ef   : > { %v534_v63 = vpop.xlane.xlu1 %533 }
 0x2f0   : > { %v535_v0 = vrot.slane %v534_v63, 4 }
 0x2f2   : > { %v536_v1 = vadd.f32 %v535_v0, %v534_v63 }
 0x2f4   : > { %v537_v3 = vrot.slane %v536_v1, 2 }
 0x2f6   : > { %v538_v4 = vadd.f32 %v537_v3, %v536_v1 }
 0x2f8   : > { %v539_v5 = vrot.slane %v538_v4, 1 }
 0x2fa   : > { %v540_v6 = vadd.f32 %v539_v5, %v538_v4 }
 0x2fc   : > { %771 = vpush %v540_v6 }
 0x32d   : > { %s772_s7 = spop %771 }
 0x32e   : > { %v543_v2 = vstv %s772_s7 }
 0x32f   : > { %v544_v8 = vadd.f32 %v543_v2, %v542_v7 }
 0x331   : > { %545 = vst [vmem:[%s1484_s22] sm:$0xff] %v544_v8 }
 0x332   : > { %1048 = shalt.err (!%p1045_p2)
}
 0x333   : > { %s1049_s27 = scalar_lea.hbm %s1512_s28, 128  ;;  %s1053_s5 = scalar_lea.hbm %s1638_s18, 256 }
 0x334   : > { %p1050_p5 = scmp.ne.s32.totalorder %s1512_s28, %s1049_s27  ;;  %p1054_p4 = scmp.lt.u32.totalorder %s1512_s28, %s1638_s18 }
 0x335   : > { %p1055_p7 = scmp.lt.u32.totalorder %s1053_s5, %s1049_s27  ;;  %p1057_p11 = scmp.lt.u32.totalorder %s1049_s27, %s1512_s28 }
 0x336   : > { %p1051_p3 = pnand %p1050_p5, %p1639_p12 }
 0x337   : > { %p1056_p9 = por %p1055_p7, %p1054_p4 }
 0x338   : > { %p1052_p8 = pneg %p1051_p3 }
 0x339   : > { %p1058_p1 = por %p1057_p11, %p1056_p9 }
 0x33b   : > { %p1059_p10 = pnand %p1058_p1, %p1052_p8 }
 0x33d   : > { %1062 = shalt.err (!%p1059_p10)
}
 0x33e   : > { %783 = dma.vmem_to_hbm [thread:$0]  (%p1639_p12), %s1514_s1, 128, %s1512_s28, %s547_s14  }
 0x33f PF: > { %s1640_s22 = sld [smem:[#allocation21_spill]]  ;;  %s1641_s6 = sld [smem:[#allocation16_spill]] }
 0x340   : > { %s1642_s8 = sld [smem:[#allocation27_spill]] }
 0x345   : > { %p806_p6 = scmp.ge.s32.totalorder %s1640_s22, 2  ;;  %s572_s19 = sand.u32 1, %s1641_s6  }
 0x346   : > { %p1643_p13 = scmp.ne.s32.totalorder %s1642_s8, 0  ;;  %s573_s23 = scalar_lea.sflag [#allocation5], %s572_s19 }
 0x348   : > { %p800_p0 = pnand %p806_p6, %p1643_p13 }
 0x34a   : > { %1120 = dma.done.wait (!%p800_p0), %s573_s23, 128  }
 0x34b   : > { %1122 = vsyncadd (!%p800_p0), %s573_s23, 4294967168  ;;  %s26_s29 = sadd.s32 1, %s1640_s22   ;;  %s1644_s13 = sld [smem:[#allocation17_spill]] }
 0x34c   : > { %p23_p2 = scmp.ge.s32.totalorder %s26_s29, 6   ;;  %s1645_s22 = sld [smem:[#allocation24_spill]] }
 0x34d   : > { %s1646_s4 = sld [smem:[#allocation25_spill]]  ;;  %s1647_s11 = sld [smem:[#allocation19_spill]] }
 0x34e   : > { %s1648_s26 = sld [smem:[#allocation20_spill]]  ;;  %s1649_s27 = sld [smem:[#allocation22_spill]] }
 0x34f   : > { %s1650_s28 = sld [smem:[#allocation23_spill]]  ;;  %s1651_s20 = smov %s1129_s21 }
 0x350   : > { %s1653_s23 = smov %s1141_s24  ;;  %s1654_s24 = smov %s1145_s25 }
 0x351   : > { %s1652_s21 = smov %s1644_s13  ;;  %25 = sbr.rel (!%p23_p2) target bundleno = 16 (0x10), region = 117 }
 0x353   : > { %s1655_s25 = smov %s1646_s4  ;;  %s1656_s4 = smov %s1647_s11 }
 0x358   :  { %578 = vsyncpa [#allocation4], 1 }
 0x359   :  { %580 = vsyncpa [#allocation4 + $0x1], 1 }
 0x35a   :  { %581 = vsyncpa [#allocation7], 1 }
 0x35b   :  { %583 = vsyncpa [#allocation7 + $0x1], 1 }
 0x35c   :  { %584 = vsyncpa [#allocation10], 1 }
 0x35d   :  { %585 = vsyncpa [#allocation5], 1 }
 0x35e   :  { %587 = vsyncpa [#allocation5 + $0x1], 1 }

</bundles_post_ra>
